<compile_context>
chip_gen: v5e
topology: v5e:2x2
jax: 0.10.0
libtpu: 0.0.40
codegen_flags: <defaults>
</compile_context>

<pallas_src>
import functools
import math

import jax
import jax.numpy as jnp
from jax.experimental import pallas as pl
from jax.experimental.pallas import tpu as pltpu


def attention_kernel(v_ref, qp_ref, wv_ref, wx_ref, bx_ref, o_ref, *, compute_dtype):
    """One grid step = (batch n, HW tile t), channel-major (C, HW) layout.

    v_ref:  (1, Cv, TH)  feature-map tile (channels x spatial), *native* dtype
    qp_ref: (1, M, 1)    precomputed q projection for batch n (f32)
    wv_ref: (M, Cv)      v_conv weight (1x1 conv, no bias), compute dtype
    wx_ref: (G, M)       x_conv weight, f32 (second dot stays f32)
    bx_ref: (G, 1)       x_conv bias (f32)
    o_ref:  (1, G, TH)   attention logits, lane-dense along HW, final dtype
    """
    # Cast on the VPU (huge slack here) instead of a separate wrapper-side
    # HBM cast pass.  No-op when compute_dtype == native dtype.
    v = v_ref[0].astype(compute_dtype)                             # (Cv, TH)

    # v_conv: (M, Cv) @ (Cv, TH) -> (M, TH), f32 accumulation on the MXU.
    v_proj = jnp.dot(wv_ref[...], v, preferred_element_type=jnp.float32)

    # tile q over all spatial positions (lane broadcast), add, ReLU — f32 VPU.
    x = jnp.maximum(v_proj + qp_ref[0], 0.0)                       # (M, TH), f32

    # x_conv: (G, M) @ (M, TH) -> (G, TH) in f32 (no per-step bf16 re-cast of x),
    # plus bias broadcast along lanes.
    out = jnp.dot(wx_ref[...], x, preferred_element_type=jnp.float32) + bx_ref[...]

    o_ref[0] = out.astype(o_ref.dtype)


def _round_up(x, m):
    return (x + m - 1) // m * m


def _plan_hw_tiling(hw, n_batch, cv, m, g, v_itemsize, out_itemsize,
                    budget_bytes=20 << 20):
    """Pick (TH, HW_pad): lane-aligned (128-multiple) tile + padded HW extent.

    Resident VMEM bytes per TH lane per grid step:
        2 * cv * v_itemsize    double-buffered input block
        2 * g  * out_itemsize  double-buffered output block
        2 * m  * 4             f32 intermediates (v_proj, x)
        cv * 4                 in-kernel working copy of the v tile
    The budget (~20 MiB) fits comfortably under the 32 MiB scoped-VMEM limit we
    request, on all of v5e / v6e / v7x.
    """
    per_lane = 2 * cv * v_itemsize + 2 * g * out_itemsize + 2 * m * 4 + cv * 4
    max_th = max(128, (budget_bytes // per_lane) // 128 * 128)

    hw_pad = _round_up(hw, 128)
    th = min(max_th, hw_pad)

    # v7x has 2 TensorCores: make sure there are >=2 grid steps when N == 1.
    if n_batch == 1 and hw_pad <= th and hw_pad >= 256:
        th = max(128, (th // 2) // 128 * 128)

    # Pad HW so TH divides it exactly (keeps every block lane-dense; padding
    # waste is < TH lanes and only materializes a copy when HW % TH != 0).
    hw_pad = _round_up(hw, th)
    return th, hw_pad


def attention_forward(v_nchw, q, wv, wq, bq, wx, bx, *, compute_dtype=jnp.bfloat16):
    """v_nchw: (N, Cv, H, W)   q: (N, Cq)
    wv: (M, Cv)  wq: (M, Cq)  bq: (M,)  wx: (G, M)  bx: (G,)
    returns: (N, G, H, W) — same as the PyTorch module forward (drop=0.0)."""
    N, Cv, H, W = v_nchw.shape
    M = wv.shape[0]
    G = wx.shape[0]
    HW = H * W
    out_dtype = v_nchw.dtype

    TH, HW_pad = _plan_hw_tiling(
        HW, N, Cv, M, G,
        jnp.dtype(v_nchw.dtype).itemsize, jnp.dtype(out_dtype).itemsize)

    # NCHW -> (N, Cv, HW): pure reshape, no HBM transpose and *no dtype cast*
    # (the cast happens in-kernel, so v is read from HBM exactly once).
    v_ncl = v_nchw.reshape(N, Cv, HW)
    if HW_pad != HW:
        # Lane-dense stores need a 128-aligned last dim; pad only in this
        # corner case (e.g. tiny feature maps like 8x8).
        v_ncl = jnp.pad(v_ncl, ((0, 0), (0, 0), (0, HW_pad - HW)))

    # Hoist the tiny q projection; shape (N, M, 1) so it broadcasts over HW lanes.
    q_proj = (q.astype(jnp.float32) @ wq.astype(jnp.float32).T
              + bq.astype(jnp.float32)).reshape(N, M, 1)

    wv_c = wv.astype(compute_dtype)                  # (M, Cv), resident in VMEM
    wx_f32 = wx.astype(jnp.float32)                  # (G, M), second dot stays f32
    bx_f32 = bx.astype(jnp.float32).reshape(G, 1)    # (G, 1)

    grid = (N, HW_pad // TH)
    kernel = functools.partial(attention_kernel, compute_dtype=compute_dtype)

    out_ncl = pl.pallas_call(
        kernel,
        out_shape=jax.ShapeDtypeStruct((N, G, HW_pad), out_dtype),
        grid_spec=pl.GridSpec(
            grid=grid,
            in_specs=[
                # per-(batch, tile) feature-map block
                pl.BlockSpec((1, Cv, TH), lambda n, t: (n, 0, t)),
                # per-batch precomputed q projection
                pl.BlockSpec((1, M, 1), lambda n, t: (n, 0, 0)),
                # weights / bias: constant block index -> stay resident in VMEM
                pl.BlockSpec((M, Cv), lambda n, t: (0, 0)),
                pl.BlockSpec((G, M), lambda n, t: (0, 0)),
                pl.BlockSpec((G, 1), lambda n, t: (0, 0)),
            ],
            out_specs=pl.BlockSpec((1, G, TH), lambda n, t: (n, 0, t)),
        ),
        compiler_params=pltpu.CompilerParams(
            dimension_semantics=("parallel", "parallel"),
            # Explicit limit: v5e's default scoped VMEM is only 16 MiB; the
            # ~20 MiB tiling budget above stays under this 32 MiB request on
            # every chip (v7x physical VMEM is 64 MiB).
            vmem_limit_bytes=32 * 1024 * 1024),
    )(v_ncl, q_proj, wv_c, wx_f32, bx_f32)

    if HW_pad != HW:
        out_ncl = out_ncl[:, :, :HW]
    # (N, G, HW) -> (N, G, H, W): pure reshape, already in the final dtype.
    return out_ncl.reshape(N, G, H, W)


def reference_forward(v_nchw, q, wv, wq, bq, wx, bx):
    """Pure-JAX f32 reference mirroring the PyTorch forward (drop=0.0)."""
    v_proj = jnp.einsum("nchw,mc->nmhw", v_nchw, wv)                    # v_conv (no bias)
    q_proj = q @ wq.T + bq                                              # q_lin
    x = jax.nn.relu(v_proj + q_proj[:, :, None, None])                  # tile + add + relu
    out = jnp.einsum("nmhw,gm->nghw", x, wx) + bx[None, :, None, None]  # x_conv
    return out


if __name__ == "__main__":
    # small shapes consistent with the module
    N = 2
    v_features = 8
    q_features = 16
    mid_features = 32
    glimpses = 2
    H = W = 8

    key = jax.random.PRNGKey(0)
    kv, kq, kwv, kwq, kbq, kwx, kbx = jax.random.split(key, 7)

    v = jax.random.normal(kv, (N, v_features, H, W), dtype=jnp.float32)
    q = jax.random.normal(kq, (N, q_features), dtype=jnp.float32)

    # deterministic parameter init (Kaiming-uniform-ish bounds, like PyTorch defaults)
    def uniform(k, shape, fan_in):
        b = 1.0 / math.sqrt(fan_in)
        return jax.random.uniform(k, shape, jnp.float32, -b, b)

    wv = uniform(kwv, (mid_features, v_features), v_features)   # v_conv weight (1x1, no bias)
    wq = uniform(kwq, (mid_features, q_features), q_features)   # q_lin weight
    bq = uniform(kbq, (mid_features,), q_features)              # q_lin bias
    wx = uniform(kwx, (glimpses, mid_features), mid_features)   # x_conv weight (1x1)
    bx = uniform(kbx, (glimpses,), mid_features)                # x_conv bias

    ref = reference_forward(v, q, wv, wq, bq, wx, bx)

    # f32 compute path: must match the reference tightly.
    out_f32 = attention_forward(v, q, wv, wq, bq, wx, bx, compute_dtype=jnp.float32)
    jax.block_until_ready(out_f32)
    assert out_f32.shape == (N, glimpses, H, W), out_f32.shape
    assert jnp.allclose(out_f32, ref, atol=1e-4, rtol=1e-4), \
        float(jnp.max(jnp.abs(out_f32 - ref)))

    # default bf16 MXU path (f32 accumulation): relaxed tolerance.
    out_bf16 = attention_forward(v, q, wv, wq, bq, wx, bx)
    jax.block_until_ready(out_bf16)
    assert out_bf16.shape == (N, glimpses, H, W), out_bf16.shape
    assert jnp.allclose(out_bf16, ref, atol=5e-2, rtol=5e-2), \
        float(jnp.max(jnp.abs(out_bf16 - ref)))

    print("KERNEL_OK")
</pallas_src>

<mosaic_0001>
module attributes {stable_mosaic.version = 11 : i64} {
  func.func @attention_kernel(%arg0: i32, %arg1: i32, %arg2: memref<1x8x128xf32, #tpu.memory_space<vmem>>, %arg3: memref<1x32x1xf32, #tpu.memory_space<vmem>>, %arg4: memref<32x8xf32, #tpu.memory_space<vmem>>, %arg5: memref<2x32xf32, #tpu.memory_space<vmem>>, %arg6: memref<2x1xf32, #tpu.memory_space<vmem>>, %arg7: memref<1x2x128xf32, #tpu.memory_space<vmem>>) attributes {dimension_semantics = [#tpu.dimension_semantics<parallel>, #tpu.dimension_semantics<parallel>], iteration_bounds = array<i64: 2, 1>, scalar_prefetch = 0 : i64, scratch_operands = 0 : i64, tpu.core_type = #tpu.core_type<tc>, window_params = [{transform_indices = @transform_0, window_bounds = array<i64: 1, 8, 128>}, {transform_indices = @transform_1, window_bounds = array<i64: 1, 32, 1>}, {pipeline_mode = #tpu.pipeline_mode<synchronous>, transform_indices = @transform_2, window_bounds = array<i64: 32, 8>}, {pipeline_mode = #tpu.pipeline_mode<synchronous>, transform_indices = @transform_3, window_bounds = array<i64: 2, 32>}, {pipeline_mode = #tpu.pipeline_mode<synchronous>, transform_indices = @transform_4, window_bounds = array<i64: 2, 1>}, {transform_indices = @transform_5, window_bounds = array<i64: 1, 2, 128>}]} {
    %c0 = arith.constant 0 : index
    %c0_0 = arith.constant 0 : index
    %c0_1 = arith.constant 0 : index
    %0 = vector.load %arg2[%c0, %c0_0, %c0_1] : memref<1x8x128xf32, #tpu.memory_space<vmem>>, vector<1x8x128xf32>
    %1 = vector.shape_cast %0 : vector<1x8x128xf32> to vector<8x128xf32>
    %c0_2 = arith.constant 0 : index
    %c0_3 = arith.constant 0 : index
    %2 = vector.load %arg4[%c0_2, %c0_3] : memref<32x8xf32, #tpu.memory_space<vmem>>, vector<32x8xf32>
    %cst = arith.constant dense<0.000000e+00> : vector<32x128xf32>
    %3 = tpu.matmul %2, %1, %cst {dimension_numbers = #tpu.dot_dimension_numbers<[1], [0], [0], [1], [0, 0, 1, 1], [], []>} : vector<32x8xf32>, vector<8x128xf32>, vector<32x128xf32> -> vector<32x128xf32>
    %c0_4 = arith.constant 0 : index
    %c0_5 = arith.constant 0 : index
    %c0_6 = arith.constant 0 : index
    %4 = vector.load %arg3[%c0_4, %c0_5, %c0_6] : memref<1x32x1xf32, #tpu.memory_space<vmem>>, vector<1x32x1xf32>
    %5 = vector.shape_cast %4 : vector<1x32x1xf32> to vector<32x1xf32>
    %6 = vector.broadcast %5 : vector<32x1xf32> to vector<32x128xf32>
    %7 = arith.addf %3, %6 : vector<32x128xf32>
    %cst_7 = arith.constant 0.000000e+00 : f32
    %8 = vector.broadcast %cst_7 : f32 to vector<32x128xf32>
    %9 = arith.maximumf %7, %8 : vector<32x128xf32>
    %c0_8 = arith.constant 0 : index
    %c0_9 = arith.constant 0 : index
    %10 = vector.load %arg5[%c0_8, %c0_9] : memref<2x32xf32, #tpu.memory_space<vmem>>, vector<2x32xf32>
    %cst_10 = arith.constant dense<0.000000e+00> : vector<2x128xf32>
    %11 = tpu.matmul %10, %9, %cst_10 {dimension_numbers = #tpu.dot_dimension_numbers<[1], [0], [0], [1], [0, 0, 1, 1], [], []>} : vector<2x32xf32>, vector<32x128xf32>, vector<2x128xf32> -> vector<2x128xf32>
    %c0_11 = arith.constant 0 : index
    %c0_12 = arith.constant 0 : index
    %12 = vector.load %arg6[%c0_11, %c0_12] : memref<2x1xf32, #tpu.memory_space<vmem>>, vector<2x1xf32>
    %13 = vector.broadcast %12 : vector<2x1xf32> to vector<2x128xf32>
    %14 = arith.addf %11, %13 : vector<2x128xf32>
    %c0_13 = arith.constant 0 : index
    %c0_14 = arith.constant 0 : index
    %c0_15 = arith.constant 0 : index
    %15 = vector.load %arg7[%c0_13, %c0_14, %c0_15] : memref<1x2x128xf32, #tpu.memory_space<vmem>>, vector<1x2x128xf32>
    %16 = vector.shape_cast %15 : vector<1x2x128xf32> to vector<2x128xf32>
    %17 = vector.shape_cast %14 : vector<2x128xf32> to vector<1x2x128xf32>
    tpu.vector_store %arg7[%c0_13, %c0_14, %c0_15], %17 {strides = array<i32>} : memref<1x2x128xf32, #tpu.memory_space<vmem>>, vector<1x2x128xf32>,
    return
  }
  func.func @transform_0(%arg0: i32, %arg1: i32) -> (i32, i32, i32) {
    %c0_i32 = arith.constant 0 : i32
    %c0_i32_0 = arith.constant 0 : i32
    return %arg0, %c0_i32, %arg1 : i32, i32, i32
  }
  func.func @transform_1(%arg0: i32, %arg1: i32) -> (i32, i32, i32) {
    %c0_i32 = arith.constant 0 : i32
    %c0_i32_0 = arith.constant 0 : i32
    %c0_i32_1 = arith.constant 0 : i32
    return %arg0, %c0_i32, %c0_i32_0 : i32, i32, i32
  }
  func.func @transform_2(%arg0: i32, %arg1: i32) -> (i32, i32) {
    %c0_i32 = arith.constant 0 : i32
    %c0_i32_0 = arith.constant 0 : i32
    %c0_i32_1 = arith.constant 0 : i32
    return %c0_i32, %c0_i32_0 : i32, i32
  }
  func.func @transform_3(%arg0: i32, %arg1: i32) -> (i32, i32) {
    %c0_i32 = arith.constant 0 : i32
    %c0_i32_0 = arith.constant 0 : i32
    %c0_i32_1 = arith.constant 0 : i32
    return %c0_i32, %c0_i32_0 : i32, i32
  }
  func.func @transform_4(%arg0: i32, %arg1: i32) -> (i32, i32) {
    %c0_i32 = arith.constant 0 : i32
    %c0_i32_0 = arith.constant 0 : i32
    %c0_i32_1 = arith.constant 0 : i32
    return %c0_i32, %c0_i32_0 : i32, i32
  }
  func.func @transform_5(%arg0: i32, %arg1: i32) -> (i32, i32, i32) {
    %c0_i32 = arith.constant 0 : i32
    %c0_i32_0 = arith.constant 0 : i32
    return %arg0, %c0_i32, %arg1 : i32, i32, i32
  }
}

</mosaic_0001>

<bundles_post_ra>
// kernel: tpu_custom_call.1
= control target key start
LH: loop header
LB: loop body
LE: loop exit
PB: predicated region body
PF: predicated region fallthrough
CT: control target
= control target key end

     0   :  { %10 = vsyncpa [#allocation3], 0  ;;  %s785_s0 = inlined_call_operand.vmem [shape: f32[2,8,128], index: 0, kind: input, shape index: {}]   ;;  %s786_s1 = inlined_call_operand.vmem [shape: f32[2,32,1], index: 1, kind: input, shape index: {}]   ;;  %s787_s2 = inlined_call_operand.vmem [shape: f32[32,8], index: 2, kind: input, shape index: {}]   ;;  %s788_s3 = inlined_call_operand.vmem [shape: f32[2,32], index: 3, kind: input, shape index: {}]   ;;  %s789_s4 = inlined_call_operand.vmem [shape: f32[2,1], index: 4, kind: input, shape index: {}]   ;;  %s790_s5 = inlined_call_operand.hbm [shape: f32[2,2,128], index: 5, kind: output, shape index: {}]  }
   0x1   :  { %12 = vsyncpa [#allocation3 + $0x1], 0  ;;  %s663_s18 = smov 0   ;;  %s665_s19 = smov 0  }
   0x2   :  { %s667_s20 = smov 0   ;;  %s669_s21 = smov 0  }
   0x3   :  { %s671_s22 = smov 0   ;;  %s673_s23 = smov 0  }
   0x4 LB: > { %s472_s24 = sadd.s32 4294967295, %s630_s23   ;;  %s473_s25 = sadd.s32 4294967294, %s630_s23   ;;  %s630_s23 = sphi %s673_s23, %s18_s23   ;;  %s626_s22 = sphi %s671_s22, %s797_s22   ;;  %s622_s21 = sphi %s669_s21, %s796_s21   ;;  %s618_s20 = sphi %s667_s20, %s795_s20   ;;  %s614_s19 = sphi %s665_s19, %s794_s19   ;;  %s610_s18 = sphi %s663_s18, %s793_s18  }
   0x5   : > { %s30_s26 = sadd.s32 1, %s626_s22  ;;  %s156_s27 = sadd.s32 1, %s618_s20 }
   0x6   : > { %p32_p0 = scmp.ge.s32.totalorder %s30_s26, 2  ;;  %p166_p1 = scmp.ne.s32.totalorder %s618_s20, %s614_s19 }
   0x7   : > { %p167_p2 = scmp.eq.s32.totalorder %s472_s24, 1  ;;  %p172_p3 = scmp.ne.s32.totalorder %s614_s19, %s610_s18 }
   0x8   : > { %s799_s26 = smov (%p32_p0, %s30_s26), 0  ;;  %p173_p5 = scmp.eq.s32.totalorder %s473_s25, 1 }
   0x9   : > { %p703_p4 = por %p167_p2, %p166_p1  ;;  %s151_s29 = ssub.s32 %s626_s22, %s799_s26 }
   0xa   : > { %p476_p6 = scmp.ge.s32.totalorder %s630_s23, 1  ;;  %p154_p7 = scmp.eq.s32.totalorder %s151_s29, 0 }
   0xb   : > { %p710_p8 = por %p173_p5, %p172_p3  ;;  %p218_p9 = scmp.lt.s32.totalorder %s630_s23, 3 }
   0xc   : > { %s716_s6 = scalar_select %p154_p7, %s618_s20, %s156_s27  }
   0xd   : > { %p219_p10 = pnand %p476_p6, %p218_p9 }
   0xe   : > { %p253_p11 = scmp.lt.s32.totalorder (!%p219_p10), %s622_s21, 1  ;;  %s250_s13 = sand.u32 (!%p219_p10), 1, %s614_s19  }
   0xf   : > { %222 = sbr.rel (%p219_p10) target bundleno = 306 (0x132), region = 40  ;;  %s477_s14 = sshll.u32 (!%p219_p10), %s250_s13, 1 }
  0x10   : > { %s487_s15 = sshll.u32 (!%p219_p10), %s622_s21, 1  ;;  %s572_s11 = scalar_lea.hbm (!%p219_p10), %s790_s5, 4 }
  0x11   : > { %s384_s24 = scalar_lea.hbm (!%p219_p10), %s790_s5, %s487_s15 }
  0x12   : > { %s388_s29 = sshll.u32 (!%p219_p10), %s384_s24, 4  ;;  %s389_s29 = int_to_ptr.hbm [resolvable:$true] %s388_s29 }
  0x14   : > { %v632_v0 = vmov 0   ;;  %s254_s7 = scalar_select %p253_p11, %s622_s21, 1  ;;  %v267_v1 = vld [vmem:[%s787_s2 + $0x8] sm:$0xff]  ;;  %vm294_vm0 = vcmask 64512   ;;  %v269_v2 = vld [vmem:[%s787_s2 + $0x18] sm:$0xff]  ;;  %v266_v5 = vld [vmem:[%s787_s2] sm:$0xff] }
  0x15   : > { %549 = vset.pattern.permute.xlu0 %v632_v0  ;;  %550 = vset.pattern.permute.xlu1 %v632_v0  ;;  %v268_v7 = vld [vmem:[%s787_s2 + $0x10] sm:$0xff]  ;;  %v341_v10 = vld [vmem:[%s789_s4] sm:$0x3]  ;;  %vm347_vm1 = vcmask 261120  }
  0x16   : > { %551 = vset.pattern.permute.xlu2 %v632_v0  ;;  %s478_s8 = sshll.u32 %s254_s7, 3  ;;  %s490_s9 = sshll.u32 %s254_s7, 5  ;;  %v340_v27 = vld [vmem:[%s788_s3] sm:$0x3] }
  0x17   : > { %s259_s12 = scalar_lea.vmem %s785_s0, %s478_s8  ;;  %s264_s25 = scalar_lea.vmem %s786_s1, %s490_s9  ;;  %344 = vperm.xlu2 %551, %v341_v10  }
  0x18   : > { %v265_v3 = vld [vmem:[%s259_s12] sm:$0xff]  ;;  %v273_v4 = vld [vmem:[%s264_s25 + $0x18] sm:$0xff]  ;;  %v271_v6 = vld [vmem:[%s264_s25 + $0x8] sm:$0xff]  ;;  %s373_s7 = scalar_lea.sflag [#allocation3], %s250_s13  ;;  %s566_s8 = sshra.s32 %s389_s29, 4  ;;  %s567_s8 = int_to_ptr.hbm [resolvable:$true] %s566_s8 }
  0x19   : > { %491 = vmatpush.msra.mxu2 %v265_v3  ;;  %492 = vmatpush.msra.mxu3 %v265_v3  ;;  %v272_v8 = vld [vmem:[%s264_s25 + $0x10] sm:$0xff]  ;;  %v270_v9 = vld [vmem:[%s264_s25] sm:$0xff]  ;;  %s252_s25 = scalar_lea.vmem [#allocation2], %s477_s14  ;;  %s568_s9 = scalar_lea.hbm %s567_s8, 2 }
  0x1a   : > { %482 = vmatmul.msk.f32.vlgmr.msra.gmra.mxu2 %vm294_vm0, %v267_v1  ;;  %484 = vmatmul.msk.f32.vlgmr.msra.gmra.mxu3 %vm294_vm0, %v269_v2  ;;  %s386_s27 = sshll.u32 %s252_s25, 4  ;;  %p569_p12 = scmp.ne.s32.totalorder %s567_s8, %s568_s9  ;;  %s387_s27 = int_to_ptr.vmem [resolvable:$true] %s386_s27 }
  0x1b   : > { %291 = vperm.xlu0 %549, %v273_v4   ;;  %322 = vmatpush.msra.mxu0 %v265_v3  ;;  %p573_p1 = scmp.lt.s32.totalorder %s567_s8, %s790_s5  ;;  %p574_p2 = scmp.lt.s32.totalorder %s572_s11, %s568_s9 }
  0x1c   : > { %481 = vmatmul.msk.f32.vlgmr.msra.gmra.mxu0 %vm294_vm0, %v266_v5  ;;  %281 = vperm.xlu1 %550, %v271_v6   ;;  %p570_p13 = pnand %p569_p12, %p703_p4 }
  0x1d   : > { %p575_p3 = por %p574_p2, %p573_p1 }
  0x1e   : > { %p571_p0 = pneg %p570_p13 }
  0x20   : > { %p576_p5 = pnand %p575_p3, %p571_p0 }
  0x22   : > { %483 = vmatmul.msk.f32.gmra.mxu2 %vm294_vm0, %v268_v7 }
  0x23   : > { %286 = vperm.xlu0 %549, %v272_v8  }
  0x24   : > { %276 = vperm.xlu1 %550, %v270_v9  }
  0x71   : > { %v345_v28 = vpop.permute.xlu2 %344 }
  0x8d   : > { %v292_v11 = vpop.permute.xlu0 %291 }
  0x8e   : > { %v282_v12 = vpop.permute.xlu1 %281 }
  0x95   : > { %v287_v17 = vpop.permute.xlu0 %286 }
  0x96   : > { %v277_v18 = vpop.permute.xlu1 %276 }
  0x99   : > { %v324_v19 = vpop.f32.mrf.mxu0 }
  0x9a   : > { %v325_v23 = vadd.f32 %v324_v19, %v277_v18 }
  0x9c   : > { %v336_v26 = vmax.f32 %v325_v23, 0.0 }
  0x9d   : > { %v327_v13 = vpop.f32.mrf.mxu2  ;;  %v333_v14 = vpop.f32.mrf.mxu3 }
  0x9e   : > { %v334_v15 = vadd.f32 %v333_v14, %v292_v11  ;;  %v328_v21 = vadd.f32 %v327_v13, %v282_v12 }
  0xa0   : > { %v339_v16 = vmax.f32 %v334_v15, 0.0  ;;  %v337_v25 = vmax.f32 %v328_v21, 0.0 }
  0xa2   : > { %363 = vmatpush.msra.mxu1 %v339_v16 }
  0xa5   : > { %v330_v20 = vpop.f32.mrf.mxu2 }
  0xa6   : > { %v331_v22 = vadd.f32 %v330_v20, %v287_v17 }
  0xa8   : > { %v338_v24 = vmax.f32 %v331_v22, 0.0 }
  0xaa   : > { %364 = vmatpush.msra.mxu1 %v338_v24 }
  0xac   : > { %365 = vmatpush.msra.mxu1 %v337_v25 }
  0xae   : > { %366 = vmatpush.msra.mxu1 %v336_v26 }
  0xaf   : > { %485 = vmatmul.msk.f32.vlgmr.msra.gmra.mxu1 %vm347_vm1, %v340_v27 }
 0x12c   : > { %v368_v29 = vpop.f32.mrf.mxu1 }
 0x12d   : > { %v369_v30 = vadd.f32 %v368_v29, %v345_v28 }
 0x12f   : > { %371 = vst [vmem:[%s252_s25] sm:$0x3] %v369_v30 }
 0x130   : > { %579 = shalt.err (!%p576_p5)
}
 0x131   : > { %493 = dma.vmem_to_hbm [thread:$0]  (%p703_p4), %s387_s27, 32, %s389_s29, %s373_s7  }
 0x132 PF: > { %p499_p6 = scmp.ge.s32.totalorder %s630_s23, 2  ;;  %s400_s13 = sand.u32 1, %s610_s18  }
 0x133   : > { %s401_s15 = scalar_lea.sflag [#allocation3], %s400_s13 }
 0x134   : > { %p496_p7 = pnand %p499_p6, %p710_p8 }
 0x136   : > { %p497_p9 = pneg %p496_p7 }
 0x138   : > { %605 = dma.done.wait (%p497_p9), %s401_s15, 32  }
 0x139   : > { %607 = vsyncadd (%p497_p9), %s401_s15, 4294967264  ;;  %s18_s23 = sadd.s32 1, %s630_s23   ;;  %s793_s18 = smov %s614_s19 }
 0x13a   : > { %p15_p10 = scmp.ge.s32.totalorder %s18_s23, 4   ;;  %s794_s19 = smov %s618_s20 }
 0x13b   : > { %s795_s20 = smov %s716_s6  ;;  %s796_s21 = smov %s626_s22 }
 0x13c   : > { %s797_s22 = smov %s799_s26  ;;  %17 = sbr.rel (!%p15_p10) target bundleno = 4 (0x4), region = 78 }
 0x141   :  { %407 = vsyncpa [#allocation3], 1 }
 0x142   :  { %409 = vsyncpa [#allocation3 + $0x1], 1 }

</bundles_post_ra>
